<compile_context>
chip_gen: v7x
topology: tpu7x:2x2x1
jax: 0.10.0
libtpu: 0.0.40
codegen_flags: <defaults>
</compile_context>

<pallas_src>
import functools

import jax
import jax.numpy as jnp
from jax.experimental import pallas as pl
from jax.experimental.pallas import tpu as pltpu


def _round_up(v, m):
    return (v + m - 1) // m * m


def _nfm_kernel(x_ref, w_cat_ref, w_p2_ref, phase_ref, pos_ref,
                w_f1_ref, b_f1_ref, w_f2_ref, b_f2_ref, o_ref, *, h_dim):
    x = x_ref[...]                                                        # (TM, C)

    # projection_in and projection_in2[0] share the x operand: one wide MXU pass.
    proj = jnp.dot(x, w_cat_ref[...], preferred_element_type=jnp.float32)  # (TM, H+Hp)
    x1 = proj[:, :h_dim]                                                   # (TM, H)
    h = proj[:, h_dim:]                                                    # (TM, Hp)

    # Periodic_activation('mix'): sin on first half, cos on second half via sin(h + pi/2).
    act = jnp.sin(h + phase_ref[...])
    x2 = jnp.dot(act.astype(w_p2_ref.dtype), w_p2_ref[...],
                 preferred_element_type=jnp.float32)                       # (TM, H)

    # z0 = x1 + x2 (LFT_block / mixer layers are identity); z = (z0 + pos) + z0.
    z = 2.0 * (x1 + x2) + pos_ref[...]

    # ll_NFF: PositionwiseFeedForward with ReLU (eval mode, no dropout).
    ff = jnp.maximum(
        jnp.dot(z.astype(w_f1_ref.dtype), w_f1_ref[...],
                preferred_element_type=jnp.float32) + b_f1_ref[...], 0.0)
    out = jnp.dot(ff.astype(w_f2_ref.dtype), w_f2_ref[...],
                  preferred_element_type=jnp.float32) + b_f2_ref[...]      # (TM, Hpad)
    o_ref[...] = out.astype(o_ref.dtype)                                   # lane-dense store


def nfm_general_forward(x, params, *, tile_m=256, mxu_dtype=jnp.float32):
    """x: (B, L, C) float32. Returns (B, L, H) float32.

    tile_m: rows per grid step (256 suits v6e/v7x MXU, use 128 on v5e).
    mxu_dtype: dtype fed to the MXU (jnp.bfloat16 recommended on v6e/v7x);
               accumulation and elementwise math stay f32.
    """
    B, L, C = x.shape
    H = params["w_in"].shape[1]
    Hp = params["w_p1"].shape[1]

    M = B * L
    tm = min(tile_m, _round_up(M, 8))        # don't over-pad tiny problems
    m_pad = _round_up(M, tm)
    h_out = _round_up(H, 128)                # lane-dense (padded) output width

    xm = x.reshape(M, C)
    pos = jnp.tile(params["pos"], (B, 1))    # (B*L, H); row m uses pos[m % L]
    if m_pad != M:
        xm = jnp.pad(xm, ((0, m_pad - M), (0, 0)))
        pos = jnp.pad(pos, ((0, m_pad - M), (0, 0)))
    xm = xm.astype(mxu_dtype)
    pos = pos.astype(jnp.float32)

    # Concatenate projection_in and projection_in2[0]; fold omega into the latter.
    w_cat = jnp.concatenate(
        [params["w_in"], params["w_p1"] * params["omega"][0, 0]], axis=1
    ).astype(mxu_dtype)                                                     # (C, H+Hp)
    w_p2 = params["w_p2"].astype(mxu_dtype)                                 # (Hp, H)
    w_f1 = params["w_f1"].astype(mxu_dtype)                                 # (H, H)
    b_f1 = params["b_f1"].astype(jnp.float32)                               # (1, H)
    w_f2 = jnp.pad(params["w_f2"], ((0, 0), (0, h_out - H))).astype(mxu_dtype)  # (H, Hpad)
    b_f2 = jnp.pad(params["b_f2"], ((0, 0), (0, h_out - H))).astype(jnp.float32)

    # Phase for the 'mix' periodic activation: 0 -> sin, pi/2 -> cos.
    phase = jnp.concatenate(
        [jnp.zeros((1, Hp // 2), jnp.float32),
         jnp.full((1, Hp - Hp // 2), jnp.pi / 2, jnp.float32)], axis=1)     # (1, Hp)

    const = lambda arr: pl.BlockSpec(arr.shape, lambda i: (0,) * arr.ndim)

    out_pad = pl.pallas_call(
        functools.partial(_nfm_kernel, h_dim=H),
        out_shape=jax.ShapeDtypeStruct((m_pad, h_out), jnp.float32),
        grid=(m_pad // tm,),
        in_specs=[
            pl.BlockSpec((tm, C), lambda i: (i, 0)),      # x rows
            const(w_cat),                                 # [W_in | W_p1*omega]
            const(w_p2),
            const(phase),
            pl.BlockSpec((tm, H), lambda i: (i, 0)),      # positional encoding rows
            const(w_f1),
            const(b_f1),
            const(w_f2),
            const(b_f2),
        ],
        out_specs=pl.BlockSpec((tm, h_out), lambda i: (i, 0)),
        compiler_params=pltpu.CompilerParams(
            dimension_semantics=("parallel",)),           # shards across TCs on v7x
    )(xm, w_cat, w_p2, phase, pos, w_f1, b_f1, w_f2, b_f2)

    return out_pad[:M, :H].reshape(B, L, H)


def sinusoidal_pos_emb(L, H):
    pos = jnp.arange(L, dtype=jnp.float32)[:, None]                      # (L, 1)
    i = jnp.arange(0, H, 2, dtype=jnp.float32)[None, :]                  # (1, H/2)
    div = jnp.exp(-jnp.log(10000.0) * i / H)
    pe = jnp.zeros((L, H), jnp.float32)
    pe = pe.at[:, 0::2].set(jnp.sin(pos * div))
    pe = pe.at[:, 1::2].set(jnp.cos(pos * div))
    return pe


def make_params(key, C, H, proj_factor, L):
    Hp = H * proj_factor
    k = jax.random.split(key, 6)
    xavier = lambda kk, fin, fout, gain=1.0: (
        gain * jnp.sqrt(2.0 / (fin + fout))
        * jax.random.normal(kk, (fin, fout), jnp.float32))
    relu_gain = jnp.sqrt(2.0)
    return {
        "w_in": xavier(k[0], C, H, relu_gain),     # projection_in (xavier_normal, relu gain)
        "w_p1": xavier(k[1], C, Hp),               # projection_in2[0]
        "w_p2": xavier(k[2], Hp, H),               # projection_in2[3]
        "w_f1": xavier(k[3], H, H),                # ll_NFF layer 1
        "b_f1": jnp.zeros((1, H), jnp.float32),
        "w_f2": xavier(k[4], H, H),                # ll_NFF layer 2
        "b_f2": jnp.zeros((1, H), jnp.float32),
        "pos": sinusoidal_pos_emb(L, H),
        "omega": jnp.ones((1, 1), jnp.float32),    # mul_omega, omega=1, not learnable
    }


if __name__ == "__main__":
    # Small shapes consistent with the module: B=2, seq L=8, channels C_=4,
    # hidden_dim=32, proj_factor=2.
    B, L, C, H, PF = 2, 8, 4, 32, 2
    key = jax.random.PRNGKey(0)
    kx, kp = jax.random.split(key)
    x = jax.random.normal(kx, (B, L, C), jnp.float32)
    params = make_params(kp, C, H, PF, L)

    # Pure-JAX reference.
    def ref(x):
        x1 = x @ params["w_in"]
        h = (x @ params["w_p1"]) * params["omega"][0, 0]
        hp = h.shape[-1]
        act = jnp.concatenate([jnp.sin(h[..., : hp // 2]), jnp.cos(h[..., hp // 2:])], -1)
        x2 = act @ params["w_p2"]
        z0 = x1 + x2
        z = z0 + params["pos"][None]
        z = z + z0
        ff = jnp.maximum(z @ params["w_f1"] + params["b_f1"], 0.0)
        return ff @ params["w_f2"] + params["b_f2"]

    r = ref(x)

    # f32 path (exact-math check).
    out = nfm_general_forward(x, params)
    jax.block_until_ready(out)
    assert out.shape == (B, L, H)
    assert jnp.allclose(out, r, atol=1e-4, rtol=1e-4)

    # bf16-MXU path (v6e/v7x production setting); f32 accumulation, looser tolerance.
    out_bf16 = nfm_general_forward(x, params, mxu_dtype=jnp.bfloat16)
    jax.block_until_ready(out_bf16)
    assert jnp.allclose(out_bf16, r, atol=0.3, rtol=0.1)

    print("KERNEL_OK")
</pallas_src>

<mosaic_0001>
module attributes {stable_mosaic.version = 11 : i64} {
  func.func @_nfm_kernel(%arg0: i32, %arg1: memref<16x4xf32, #tpu.memory_space<vmem>>, %arg2: memref<4x96xf32, #tpu.memory_space<vmem>>, %arg3: memref<64x32xf32, #tpu.memory_space<vmem>>, %arg4: memref<1x64xf32, #tpu.memory_space<vmem>>, %arg5: memref<16x32xf32, #tpu.memory_space<vmem>>, %arg6: memref<32x32xf32, #tpu.memory_space<vmem>>, %arg7: memref<1x32xf32, #tpu.memory_space<vmem>>, %arg8: memref<32x128xf32, #tpu.memory_space<vmem>>, %arg9: memref<1x128xf32, #tpu.memory_space<vmem>>, %arg10: memref<16x128xf32, #tpu.memory_space<vmem>>) attributes {dimension_semantics = [#tpu.dimension_semantics<parallel>], iteration_bounds = array<i64: 1>, scalar_prefetch = 0 : i64, scratch_operands = 0 : i64, tpu.core_type = #tpu.core_type<tc>, window_params = [{transform_indices = @transform_0, window_bounds = array<i64: 16, 4>}, {pipeline_mode = #tpu.pipeline_mode<synchronous>, transform_indices = @transform_1, window_bounds = array<i64: 4, 96>}, {pipeline_mode = #tpu.pipeline_mode<synchronous>, transform_indices = @transform_2, window_bounds = array<i64: 64, 32>}, {pipeline_mode = #tpu.pipeline_mode<synchronous>, transform_indices = @transform_3, window_bounds = array<i64: 1, 64>}, {transform_indices = @transform_4, window_bounds = array<i64: 16, 32>}, {pipeline_mode = #tpu.pipeline_mode<synchronous>, transform_indices = @transform_5, window_bounds = array<i64: 32, 32>}, {pipeline_mode = #tpu.pipeline_mode<synchronous>, transform_indices = @transform_6, window_bounds = array<i64: 1, 32>}, {pipeline_mode = #tpu.pipeline_mode<synchronous>, transform_indices = @transform_7, window_bounds = array<i64: 32, 128>}, {pipeline_mode = #tpu.pipeline_mode<synchronous>, transform_indices = @transform_8, window_bounds = array<i64: 1, 128>}, {transform_indices = @transform_9, window_bounds = array<i64: 16, 128>}]} {
    %c0 = arith.constant 0 : index
    %c0_0 = arith.constant 0 : index
    %0 = vector.load %arg1[%c0, %c0_0] : memref<16x4xf32, #tpu.memory_space<vmem>>, vector<16x4xf32>
    %c0_1 = arith.constant 0 : index
    %c0_2 = arith.constant 0 : index
    %1 = vector.load %arg2[%c0_1, %c0_2] : memref<4x96xf32, #tpu.memory_space<vmem>>, vector<4x96xf32>
    %cst = arith.constant dense<0.000000e+00> : vector<16x96xf32>
    %2 = tpu.matmul %0, %1, %cst {dimension_numbers = #tpu.dot_dimension_numbers<[1], [0], [0], [1], [0, 0, 1, 1], [], []>} : vector<16x4xf32>, vector<4x96xf32>, vector<16x96xf32> -> vector<16x96xf32>
    %3 = vector.extract_strided_slice %2 {offsets = [0, 0], sizes = [16, 32], strides = [1, 1]} : vector<16x96xf32> to vector<16x32xf32>
    %4 = vector.extract_strided_slice %2 {offsets = [0, 32], sizes = [16, 64], strides = [1, 1]} : vector<16x96xf32> to vector<16x64xf32>
    %c0_3 = arith.constant 0 : index
    %c0_4 = arith.constant 0 : index
    %5 = vector.load %arg4[%c0_3, %c0_4] : memref<1x64xf32, #tpu.memory_space<vmem>>, vector<1x64xf32>
    %6 = vector.broadcast %5 : vector<1x64xf32> to vector<16x64xf32>
    %7 = arith.addf %4, %6 : vector<16x64xf32>
    %8 = math.sin %7 : vector<16x64xf32>
    %c0_5 = arith.constant 0 : index
    %c0_6 = arith.constant 0 : index
    %9 = vector.load %arg3[%c0_5, %c0_6] : memref<64x32xf32, #tpu.memory_space<vmem>>, vector<64x32xf32>
    %cst_7 = arith.constant dense<0.000000e+00> : vector<16x32xf32>
    %10 = tpu.matmul %8, %9, %cst_7 {dimension_numbers = #tpu.dot_dimension_numbers<[1], [0], [0], [1], [0, 0, 1, 1], [], []>} : vector<16x64xf32>, vector<64x32xf32>, vector<16x32xf32> -> vector<16x32xf32>
    %11 = arith.addf %3, %10 : vector<16x32xf32>
    %cst_8 = arith.constant 2.000000e+00 : f32
    %12 = vector.broadcast %cst_8 : f32 to vector<16x32xf32>
    %13 = arith.mulf %12, %11 : vector<16x32xf32>
    %c0_9 = arith.constant 0 : index
    %c0_10 = arith.constant 0 : index
    %14 = vector.load %arg5[%c0_9, %c0_10] : memref<16x32xf32, #tpu.memory_space<vmem>>, vector<16x32xf32>
    %15 = arith.addf %13, %14 : vector<16x32xf32>
    %c0_11 = arith.constant 0 : index
    %c0_12 = arith.constant 0 : index
    %16 = vector.load %arg6[%c0_11, %c0_12] : memref<32x32xf32, #tpu.memory_space<vmem>>, vector<32x32xf32>
    %cst_13 = arith.constant dense<0.000000e+00> : vector<16x32xf32>
    %17 = tpu.matmul %15, %16, %cst_13 {dimension_numbers = #tpu.dot_dimension_numbers<[1], [0], [0], [1], [0, 0, 1, 1], [], []>} : vector<16x32xf32>, vector<32x32xf32>, vector<16x32xf32> -> vector<16x32xf32>
    %c0_14 = arith.constant 0 : index
    %c0_15 = arith.constant 0 : index
    %18 = vector.load %arg7[%c0_14, %c0_15] : memref<1x32xf32, #tpu.memory_space<vmem>>, vector<1x32xf32>
    %19 = vector.broadcast %18 : vector<1x32xf32> to vector<16x32xf32>
    %20 = arith.addf %17, %19 : vector<16x32xf32>
    %cst_16 = arith.constant 0.000000e+00 : f32
    %21 = vector.broadcast %cst_16 : f32 to vector<16x32xf32>
    %22 = arith.maximumf %20, %21 : vector<16x32xf32>
    %c0_17 = arith.constant 0 : index
    %c0_18 = arith.constant 0 : index
    %23 = vector.load %arg8[%c0_17, %c0_18] : memref<32x128xf32, #tpu.memory_space<vmem>>, vector<32x128xf32>
    %cst_19 = arith.constant dense<0.000000e+00> : vector<16x128xf32>
    %24 = tpu.matmul %22, %23, %cst_19 {dimension_numbers = #tpu.dot_dimension_numbers<[1], [0], [0], [1], [0, 0, 1, 1], [], []>} : vector<16x32xf32>, vector<32x128xf32>, vector<16x128xf32> -> vector<16x128xf32>
    %c0_20 = arith.constant 0 : index
    %c0_21 = arith.constant 0 : index
    %25 = vector.load %arg9[%c0_20, %c0_21] : memref<1x128xf32, #tpu.memory_space<vmem>>, vector<1x128xf32>
    %26 = vector.broadcast %25 : vector<1x128xf32> to vector<16x128xf32>
    %27 = arith.addf %24, %26 : vector<16x128xf32>
    %c0_22 = arith.constant 0 : index
    %c0_23 = arith.constant 0 : index
    %28 = vector.load %arg10[%c0_22, %c0_23] : memref<16x128xf32, #tpu.memory_space<vmem>>, vector<16x128xf32>
    tpu.vector_store %arg10[%c0_22, %c0_23], %27 {strides = array<i32>} : memref<16x128xf32, #tpu.memory_space<vmem>>, vector<16x128xf32>,
    return
  }
  func.func @transform_0(%arg0: i32) -> (i32, i32) {
    %c0_i32 = arith.constant 0 : i32
    %c0_i32_0 = arith.constant 0 : i32
    return %arg0, %c0_i32 : i32, i32
  }
  func.func @transform_1(%arg0: i32) -> (i32, i32) {
    %c0_i32 = arith.constant 0 : i32
    %c0_i32_0 = arith.constant 0 : i32
    %c0_i32_1 = arith.constant 0 : i32
    return %c0_i32, %c0_i32_0 : i32, i32
  }
  func.func @transform_2(%arg0: i32) -> (i32, i32) {
    %c0_i32 = arith.constant 0 : i32
    %c0_i32_0 = arith.constant 0 : i32
    %c0_i32_1 = arith.constant 0 : i32
    return %c0_i32, %c0_i32_0 : i32, i32
  }
  func.func @transform_3(%arg0: i32) -> (i32, i32) {
    %c0_i32 = arith.constant 0 : i32
    %c0_i32_0 = arith.constant 0 : i32
    %c0_i32_1 = arith.constant 0 : i32
    return %c0_i32, %c0_i32_0 : i32, i32
  }
  func.func @transform_4(%arg0: i32) -> (i32, i32) {
    %c0_i32 = arith.constant 0 : i32
    %c0_i32_0 = arith.constant 0 : i32
    return %arg0, %c0_i32 : i32, i32
  }
  func.func @transform_5(%arg0: i32) -> (i32, i32) {
    %c0_i32 = arith.constant 0 : i32
    %c0_i32_0 = arith.constant 0 : i32
    %c0_i32_1 = arith.constant 0 : i32
    return %c0_i32, %c0_i32_0 : i32, i32
  }
  func.func @transform_6(%arg0: i32) -> (i32, i32) {
    %c0_i32 = arith.constant 0 : i32
    %c0_i32_0 = arith.constant 0 : i32
    %c0_i32_1 = arith.constant 0 : i32
    return %c0_i32, %c0_i32_0 : i32, i32
  }
  func.func @transform_7(%arg0: i32) -> (i32, i32) {
    %c0_i32 = arith.constant 0 : i32
    %c0_i32_0 = arith.constant 0 : i32
    %c0_i32_1 = arith.constant 0 : i32
    return %c0_i32, %c0_i32_0 : i32, i32
  }
  func.func @transform_8(%arg0: i32) -> (i32, i32) {
    %c0_i32 = arith.constant 0 : i32
    %c0_i32_0 = arith.constant 0 : i32
    %c0_i32_1 = arith.constant 0 : i32
    return %c0_i32, %c0_i32_0 : i32, i32
  }
  func.func @transform_9(%arg0: i32) -> (i32, i32) {
    %c0_i32 = arith.constant 0 : i32
    %c0_i32_0 = arith.constant 0 : i32
    return %arg0, %c0_i32 : i32, i32
  }
}

</mosaic_0001>

<bundles_post_ra>
// kernel: tpu_custom_call.1
= control target key start
LH: loop header
LB: loop body
LE: loop exit
PB: predicated region body
PF: predicated region fallthrough
CT: control target
= control target key end

     0   :  { %vm43_vm0 = vcmask 1043456   ;;  %vm36_vm1 = vcmask 31744   ;;  %s1049_s0 = inlined_call_operand.vmem [shape: f32[16,4], index: 0, kind: input, shape index: {}]   ;;  %s1050_s1 = inlined_call_operand.vmem [shape: f32[4,96], index: 1, kind: input, shape index: {}]   ;;  %s1051_s2 = inlined_call_operand.vmem [shape: f32[64,32], index: 2, kind: input, shape index: {}]   ;;  %s1052_s3 = inlined_call_operand.vmem [shape: f32[1,64], index: 3, kind: input, shape index: {}]   ;;  %s1053_s4 = inlined_call_operand.vmem [shape: f32[16,32], index: 4, kind: input, shape index: {}]   ;;  %s1054_s5 = inlined_call_operand.vmem [shape: f32[32,32], index: 5, kind: input, shape index: {}]   ;;  %s1055_s6 = inlined_call_operand.vmem [shape: f32[1,32], index: 6, kind: input, shape index: {}]   ;;  %s1056_s7 = inlined_call_operand.vmem [shape: f32[32,128], index: 7, kind: input, shape index: {}]   ;;  %s1057_s8 = inlined_call_operand.vmem [shape: f32[1,128], index: 8, kind: input, shape index: {}]   ;;  %s1058_s9 = inlined_call_operand.hbm [shape: f32[16,128], index: 9, kind: output, shape index: {}]  }
   0x1   :  { %v35_v0 = vld [vmem:[%s1050_s1] sm:$0xf]  ;;  %v34_v2 = vld [vmem:[%s1049_s0 + $0x8] sm:$0xff] }
   0x2   :  { %v33_v1 = vld [vmem:[%s1049_s0] sm:$0xff]  ;;  %693 = vmatprep.subr.msk.mxu0 %vm43_vm0, %v35_v0 }
   0x3   :  { %695 = vmatprep.mubr.msk.f32.mxu0 %vm36_vm1, %v33_v1  ;;  %v651_v3 = vld [vmem:[%s1052_s3] ss:$0 sm:$0xff] }
   0x4   :  { %14 = vsyncpa [#allocation3], 0  ;;  %694 = vmatpush3.msk.msra.mxu0 %vm43_vm0, %v35_v0  ;;  %s822_s17 = smov 32   ;;  %v341_v4 = vld [vmem:[%s1051_s2] sm:$0xff]  ;;  %v342_v5 = vld [vmem:[%s1051_s2 + $0x8] sm:$0xff] }
   0x5   :  { %128 = vrot.lane.b32.xlu0 %v651_v3, %s822_s17  ;;  %696 = vmatmul.mubr.msk.f32.vlgmr.msra.gmra.mrb[0].mxu0 %vm36_vm1, %v34_v2  ;;  %v343_v6 = vld [vmem:[%s1051_s2 + $0x10] sm:$0xff]  ;;  %v739_v7 = vpack.c.bf16 %v342_v5, %v341_v4  ;;  %v344_v8 = vld [vmem:[%s1051_s2 + $0x18] sm:$0xff]  ;;  %v345_v10 = vld [vmem:[%s1051_s2 + $0x20] sm:$0xff]  ;;  %v823_v45 = vmov 683565275  }
   0x6   :  { %v743_v9 = vpack.c.bf16 %v344_v8, %v343_v6  ;;  %v346_v11 = vld [vmem:[%s1051_s2 + $0x28] sm:$0xff]  ;;  %v347_v13 = vld [vmem:[%s1051_s2 + $0x30] sm:$0xff]  ;;  %v348_v14 = vld [vmem:[%s1051_s2 + $0x38] sm:$0xff]  ;;  %v824_v47 = vmov 2475754826   ;;  %s829_s2 = smov 96  }
   0x7   :  { %740 = vmatprep.subr.bf16.mxu1 %v739_v7  ;;  %v747_v12 = vpack.c.bf16 %v346_v11, %v345_v10  ;;  %v751_v15 = vpack.c.bf16 %v348_v14, %v347_v13  ;;  %v825_v49 = vmov 2131351028   ;;  %v826_v51 = vmov 2102212464  }
   0x8   :  { %742 = vmatpush3.bf16.msra.mxu1 %v739_v7  ;;  %v827_v56 = vmov 920167782   ;;  %v828_v58 = vmov 1326507024  }
   0x9   :  { %744 = vmatprep.subr.bf16.mxu1 %v743_v9 }
   0xc   :  { %746 = vmatpush3.bf16.msra.mxu1 %v743_v9 }
   0xd   :  { %748 = vmatprep.subr.bf16.mxu1 %v747_v12 }
  0x10   :  { %750 = vmatpush3.bf16.msra.mxu1 %v747_v12 }
  0x11   :  { %752 = vmatprep.subr.bf16.mxu1 %v751_v15 }
  0x14   :  { %754 = vmatpush3.bf16.msra.mxu1 %v751_v15 }
  0x77   :  { %v129_v16 = vpop.permute.xlu0 %128 }
  0xd8   :  { %v919_v17 = vpop.f32.mrb[0].mxu0 }
  0xd9   :  { %v922_v18 = vadd.f32 %v919_v17, %v129_v16  ;;  %v924_v19 = vpop.f32.mrb[1].mxu0 }
  0xda   :  { %v927_v20 = vadd.f32 %v129_v16, %v924_v19 }
  0xdb   :  { %v240_v21 = vand.u32 2139095040, %v922_v18  ;;  %v237_v22 = vand.u32 2147483647, %v922_v18  ;;  %vm239_vm0 = vcmp.lt.s32.totalorder %v922_v18, 0 }
  0xdc   :  { %v136_v23 = vand.u32 2139095040, %v927_v20  ;;  %v133_v24 = vand.u32 2147483647, %v927_v20 }
  0xdd   :  { %v241_v25 = vshrl.u32 %v240_v21, 23  ;;  %v244_v27 = vand.u32 8388607, %v237_v22  ;;  %vm238_vm1 = vcmp.le.f32.partialorder %v237_v22, 0.7853982 }
  0xde   :  { %v137_v26 = vshrl.u32 %v136_v23, 23  ;;  %v140_v29 = vand.u32 8388607, %v133_v24 }
  0xdf   :  { %v656_v28 = vadd.s32 4294967169, %v241_v25  ;;  %v245_v33 = vor.u32 8388608, %v244_v27 }
  0xe0   :  { %v652_v30 = vadd.s32 4294967169, %v137_v26  ;;  %v141_v34 = vor.u32 8388608, %v140_v29 }
  0xe1   :  { %v247_v31 = vadd.s32 1, %v656_v28  ;;  %v937_v39 = vshll.u32 %v245_v33, 8 }
  0xe2   :  { %v143_v32 = vadd.s32 1, %v652_v30  ;;  %v941_v43 = vshll.u32 %v141_v34, 8 }
  0xe3   :  { %vm248_vm2 = vcmp.gt.s32.totalorder %v247_v31, 0 }
  0xe4   :  { %v249_v35 = vsel %vm248_vm2, %v247_v31, 0  ;;  %vm144_vm3 = vcmp.gt.s32.totalorder %v143_v32, 0  ;;  %vm135_vm2 = vcmp.lt.s32.totalorder %v927_v20, 0 }
  0xe5   :  { %v251_v36 = vand.u32 31, %v249_v35  ;;  %v145_v37 = vsel %vm144_vm3, %v143_v32, 0  ;;  %v250_v40 = vshrl.u32 %v249_v35, 5  ;;  %vm134_vm3 = vcmp.le.f32.partialorder %v133_v24, 0.7853982 }
  0xe6   :  { %v147_v38 = vand.u32 31, %v145_v37  ;;  %v939_v42 = vshrl.u32 %v145_v37, 5 }
  0xe7   :  { %v252_v41 = vsub.s32 32, %v251_v36  ;;  %v254_v46 = vshll.u32 %v823_v45, %v251_v36  ;;  %v257_v48 = vshll.u32 %v824_v47, %v251_v36  ;;  %v260_v50 = vshll.u32 %v825_v49, %v251_v36 }
  0xe8   :  { %v148_v44 = vsub.s32 32, %v147_v38  ;;  %v159_v52 = vshll.u32 %v826_v51, %v147_v38  ;;  %v263_v60 = vshll.u32 %v826_v51, %v251_v36  ;;  %v162_v62 = vshll.u32 %v827_v56, %v147_v38 }
  0xe9   :  { %v255_v53 = vshrl.u32 %v824_v47, %v252_v41  ;;  %v258_v54 = vshrl.u32 %v825_v49, %v252_v41  ;;  %v261_v55 = vshrl.u32 %v826_v51, %v252_v41  ;;  %v264_v61 = vshrl.u32 %v827_v56, %v252_v41 }
  0xea   :  { %v160_v57 = vshrl.u32 %v827_v56, %v148_v44  ;;  %v163_v59 = vshrl.u32 %v828_v58, %v148_v44  ;;  %v253_v2 = vshrl.u32 %v823_v45, %v252_v41  ;;  %v266_v4 = vshll.u32 %v827_v56, %v251_v36 }
  0xeb   :  { %v256_v63 = vor.u32 %v255_v53, %v254_v46  ;;  %v259_v0 = vor.u32 %v258_v54, %v257_v48  ;;  %v262_v1 = vor.u32 %v261_v55, %v260_v50  ;;  %v265_v3 = vor.u32 %v264_v61, %v263_v60 }
  0xec   :  { %v267_v5 = vshrl.u32 %v828_v58, %v252_v41  ;;  %v161_v6 = vor.u32 %v160_v57, %v159_v52  ;;  %v164_v7 = vor.u32 %v163_v59, %v162_v62  ;;  %vm168_vm4 = vcmp.lt.s32.totalorder %v939_v42, 4 }
  0xed   :  { %vm269_vm5 = vcmp.lt.s32.totalorder %v250_v40, 1  ;;  %vm271_vm6 = vcmp.lt.s32.totalorder %v250_v40, 3  ;;  %vm272_vm7 = vcmp.lt.s32.totalorder %v250_v40, 4  ;;  %vm270_vm8 = vcmp.lt.s32.totalorder %v250_v40, 2 }
  0xee   :  { %v268_v8 = vor.u32 %v267_v5, %v266_v4  ;;  %v273_v9 = vsel %vm269_vm5, %v253_v2, %v256_v63  ;;  %v274_v10 = vsel %vm272_vm7, %v262_v1, 2102212464  ;;  %v277_v11 = vsel %vm269_vm5, %v256_v63, %v259_v0 }
  0xef   :  { %v278_v12 = vsel %vm272_vm7, %v265_v3, 920167782  ;;  %v281_v13 = vsel %vm269_vm5, %v259_v0, %v262_v1  ;;  %v275_v14 = vsel %vm271_vm6, %v259_v0, %v274_v10  ;;  %v174_v21 = vsel %vm168_vm4, %v161_v6, 920167782 }
  0xf0   :  { %v279_v15 = vsel %vm271_vm6, %v262_v1, %v278_v12  ;;  %v282_v16 = vsel %vm272_vm7, %v268_v8, 1326507024  ;;  %v178_v23 = vsel %vm168_vm4, %v164_v7, 1326507024  ;;  %v276_v27 = vsel %vm270_vm8, %v273_v9, %v275_v14 }
  0xf1   :  { %v280_v25 = vsel %vm270_vm8, %v277_v11, %v279_v15  ;;  %v283_v26 = vsel %vm271_vm6, %v265_v3, %v282_v16  ;;  %v150_v33 = vshll.u32 %v823_v45, %v147_v38  ;;  %v151_v34 = vshrl.u32 %v824_v47, %v148_v44 }
  0xf2   :  { %v284_v28 = vsel %vm270_vm8, %v281_v13, %v283_v26  ;;  %v949_v29 = vmul.u32.u64.low %v937_v39, %v280_v25  ;;  %v950_v30 = vmul.u32.u64.high %v937_v39, %v280_v25, %v949_v29  ;;  %v153_v35 = vshll.u32 %v824_v47, %v147_v38 }
  0xf3   :  { %v953_v31 = vmul.u32.u64.low %v937_v39, %v284_v28  ;;  %v954_v32 = vmul.u32.u64.high %v937_v39, %v284_v28, %v953_v31  ;;  %v154_v36 = vshrl.u32 %v825_v49, %v148_v44  ;;  %v156_v37 = vshll.u32 %v825_v49, %v147_v38 }
  0xf4   :  { %v157_v40 = vshrl.u32 %v826_v51, %v148_v44  ;;  %v292_v41 = vmul.u32 %v937_v39, %v276_v27  ;;  %v149_v46 = vshrl.u32 %v823_v45, %v148_v44  ;;  %v152_v48 = vor.u32 %v151_v34, %v150_v33 }
  0xf5   :  { %vm165_vm9 = vcmp.lt.s32.totalorder %v939_v42, 1  ;;  %v295_v50 = vadd.s32 1, %v950_v30  ;;  %v155_v52 = vor.u32 %v154_v36, %v153_v35  ;;  %vm167_vm10 = vcmp.lt.s32.totalorder %v939_v42, 3 }
  0xf6   :  { %v158_v53 = vor.u32 %v157_v40, %v156_v37  ;;  %vm294_vm11 = vc.u32 %v954_v32, %v949_v29  ;;  %vm166_vm12 = vcmp.lt.s32.totalorder %v939_v42, 2  ;;  %v169_v38 = vsel %vm165_vm9, %v149_v46, %v152_v48 }
  0xf7   :  { %v179_v47 = vsel %vm167_vm10, %v161_v6, %v178_v23  ;;  %v296_v39 = vsel %vm294_vm11, %v295_v50, %v950_v30  ;;  %v173_v45 = vsel %vm165_vm9, %v152_v48, %v155_v52  ;;  %v293_v16 = vadd.s32 %v949_v29, %v954_v32 }
  0xf8   :  { %v170_v44 = vsel %vm168_vm4, %v158_v53, 2102212464  ;;  %v175_v49 = vsel %vm167_vm10, %v158_v53, %v174_v21  ;;  %v297_v51 = vadd.s32 %v296_v39, %v292_v41  ;;  %v177_v56 = vsel %vm165_vm9, %v155_v52, %v158_v53 }
  0xf9   :  { %v171_v54 = vsel %vm167_vm10, %v155_v52, %v170_v44  ;;  %v176_v55 = vsel %vm166_vm12, %v173_v45, %v175_v49  ;;  %v180_v57 = vsel %vm166_vm12, %v177_v56, %v179_v47  ;;  %vm329_vm7 = vweird.f32 %v922_v18 }
  0xfa   :  { %v972_v58 = vmul.u32.u64.low %v941_v43, %v176_v55  ;;  %v973_v59 = vmul.u32.u64.high %v941_v43, %v176_v55, %v972_v58  ;;  %v298_v60 = vadd.s32 536870912, %v297_v51  ;;  %v172_v63 = vsel %vm166_vm12, %v169_v38, %v171_v54 }
  0xfb   :  { %v976_v61 = vmul.u32.u64.low %v941_v43, %v180_v57  ;;  %v977_v62 = vmul.u32.u64.high %v941_v43, %v180_v57, %v976_v61  ;;  %v188_v3 = vmul.u32 %v941_v43, %v172_v63  ;;  %vm225_vm11 = vweird.f32 %v927_v20 }
  0xfc   :  { %v299_v0 = vshrl.u32 %v298_v60, 30  ;;  %v191_v1 = vadd.s32 1, %v973_v59  ;;  %vm355_vm12 = vcmask 523264  }
  0xfd   :  { %vm190_vm13 = vc.u32 %v977_v62, %v972_v58  ;;  %v189_v40 = vadd.s32 %v972_v58, %v977_v62 }
  0xfe   :  { %v300_v2 = vshll.u32 %v299_v0, 30  ;;  %v192_v42 = vsel %vm190_vm13, %v191_v1, %v973_v59  ;;  %v323_v32 = vsub.s32 4, %v299_v0  ;;  %vm454_vm13 = vcmask 261120  }
  0xff   :  { %v193_v5 = vadd.s32 %v192_v42, %v188_v3 }
 0x100   :  { %v301_v4 = vsub.s32 %v297_v51, %v300_v2  ;;  %v324_v44 = vsel %vm239_vm0, %v323_v32, %v299_v0 }
 0x101   :  { %v194_v7 = vadd.s32 536870912, %v193_v5  ;;  %v326_v51 = vsel %vm238_vm1, 0, %v324_v44  ;;  %v665_v44 = vld [vmem:[%s1057_s8] ss:$0 sm:$0xff] }
 0x102   :  { %v303_v6 = vsub.s32 0, %v301_v4  ;;  %v330_v58 = vadd.s32 3, %v326_v51 }
 0x103   :  { %v195_v9 = vshrl.u32 %v194_v7, 30 }
 0x104   :  { %v657_v8 = vmin.u32 %v303_v6, %v301_v4  ;;  %v331_v61 = vand.u32 3, %v330_v58 }
 0x105   :  { %v196_v11 = vshll.u32 %v195_v9, 30  ;;  %v219_v57 = vsub.s32 4, %v195_v9 }
 0x106   :  { %v305_v10 = vclz %v657_v8  ;;  %vm336_vm4 = vcmp.eq.s32.totalorder %v331_v61, 2  ;;  %vm333_vm5 = vcmp.eq.s32.totalorder %v331_v61, 0  ;;  %vm332_vm6 = vcmp.lt.s32.totalorder %v331_v61, 2 }
 0x107   :  { %v197_v13 = vsub.s32 %v193_v5, %v196_v11  ;;  %v220_v60 = vsel %vm135_vm2, %v219_v57, %v195_v9 }
 0x108   :  { %v658_v12 = vadd.s32 4294967294, %v305_v10  ;;  %v222_v0 = vsel %vm134_vm3, 0, %v220_v60 }
 0x109   :  { %v199_v15 = vsub.s32 0, %v197_v13 }
 0x10a   :  { %vm659_vm14 = vcmp.lt.s32.totalorder %v658_v12, 0 }
 0x10b   :  { %v308_v14 = vsel %vm659_vm14, 0, %v658_v12  ;;  %v653_v23 = vmin.u32 %v199_v15, %v197_v13 }
 0x10c   :  { %v309_v43 = vsub.s32 32, %v308_v14  ;;  %v313_v21 = vsub.s32 4294967266, %v308_v14  ;;  %v310_v25 = vshll.u32 %v301_v4, %v308_v14  ;;  %v226_v4 = vadd.s32 3, %v222_v0 }
 0x10d   :  { %v201_v28 = vclz %v653_v23 }
 0x10e   :  { %v311_v26 = vshrl.u32 %v293_v16, %v309_v43  ;;  %v314_v27 = vadd.s32 127, %v313_v21  ;;  %v227_v7 = vand.u32 3, %v226_v4  ;;  %v443_v43 = vld [vmem:[%s1054_s5] sm:$0xff]  ;;  %v444_v21 = vld [vmem:[%s1054_s5 + $0x8] sm:$0xff] }
 0x10f   :  { %v654_v33 = vadd.s32 4294967294, %v201_v28  ;;  %v755_v23 = vpack.c.bf16 %v444_v21, %v443_v43  ;;  %v539_v28 = vld [vmem:[%s1056_s7 + $0x8] sm:$0xff] }
 0x110   :  { %v312_v30 = vor.u32 %v311_v26, %v310_v25  ;;  %v315_v31 = vshll.u32 %v314_v27, 23  ;;  %vm232_vm8 = vcmp.eq.s32.totalorder %v227_v7, 2  ;;  %vm229_vm9 = vcmp.eq.s32.totalorder %v227_v7, 0  ;;  %v446_v25 = vld [vmem:[%s1054_s5 + $0x18] sm:$0xff]  ;;  %v538_v27 = vld [vmem:[%s1056_s7] sm:$0xff] }
 0x111   :  { %vm655_vm15 = vcmp.lt.s32.totalorder %v654_v33, 0  ;;  %vm228_vm10 = vcmp.lt.s32.totalorder %v227_v7, 2  ;;  %756 = vmatprep.subr.bf16.mxu0 %v755_v23 }
 0x112   :  { %v316_v34 = vor.u32 4788187, %v315_v31  ;;  %v319_v36 = vcvt.s32.f32 %v312_v30  ;;  %v204_v37 = vsel %vm655_vm15, 0, %v654_v33  ;;  %758 = vmatpush3.bf16.msra.mxu0 %v755_v23  ;;  %v763_v30 = vpack.c.bf16 %v539_v28, %v538_v27 }
 0x113   :  { %v205_v41 = vsub.s32 32, %v204_v37  ;;  %v209_v46 = vsub.s32 4294967266, %v204_v37  ;;  %v206_v48 = vshll.u32 %v197_v13, %v204_v37  ;;  %v439_v37 = vld [vmem:[%s1053_s4] sm:$0xff] }
 0x114   :  { %v317_v35 = vand.u32 2147483647, %v316_v34 }
 0x115   :  { %v207_v50 = vshrl.u32 %v189_v40, %v205_v41  ;;  %v210_v52 = vadd.s32 127, %v209_v46  ;;  %v440_v40 = vld [vmem:[%s1053_s4 + $0x8] sm:$0xff] }
 0x116   :  { %v320_v29 = vmul.f32 %v319_v36, %v317_v35 }
 0x117   :  { %v208_v38 = vor.u32 %v207_v50, %v206_v48  ;;  %v211_v47 = vshll.u32 %v210_v52, 23  ;;  %v662_v48 = vld [vmem:[%s1055_s6] ss:$0 sm:$0xff] }
 0x118   :  { %v321_v53 = vxor.u32 2147483648, %v320_v29 }
 0x119   :  { %v212_v49 = vor.u32 4788187, %v211_v47  ;;  %v215_v55 = vcvt.s32.f32 %v208_v38 }
 0x11a   :  { %v322_v39 = vsel %vm239_vm0, %v321_v53, %v320_v29 }
 0x11b   :  { %v325_v45 = vsel %vm238_vm1, %v922_v18, %v322_v39  ;;  %v213_v54 = vand.u32 2147483647, %v212_v49 }
 0x11c   :  { %790 = vcosq.f32 %v325_v45 }
 0x11d   :  { %792 = vsinq.f32 %v325_v45  ;;  %v216_v56 = vmul.f32 %v215_v55, %v213_v54 }
 0x11f   :  { %v217_v59 = vxor.u32 2147483648, %v216_v56 }
 0x121   :  { %v218_v22 = vsel %vm135_vm2, %v217_v59, %v216_v56 }
 0x122   :  { %v221_v62 = vsel %vm134_vm3, %v927_v20, %v218_v22  ;;  %v445_v20 = vld [vmem:[%s1054_s5 + $0x10] sm:$0xff] }
 0x123   :  { %794 = vcosq.f32 %v221_v62  ;;  %v759_v26 = vpack.c.bf16 %v446_v25, %v445_v20 }
 0x124   :  { %796 = vsinq.f32 %v221_v62 }
 0x125   :  { %760 = vmatprep.subr.bf16.mxu0 %v759_v26 }
 0x126   :  { %v791_v63 = vpop.eup %790  ;;  %762 = vmatpush3.bf16.msra.mxu0 %v759_v26 }
 0x127   :  { %v793_v1 = vpop.eup %792  ;;  %v337_v2 = vxor.u32 2147483648, %v791_v63  ;;  %764 = vmatprep.subr.bf16.mxu0 %v763_v30 }
 0x128   :  { %v334_v3 = vxor.u32 2147483648, %v793_v1 }
 0x129   :  { %v338_v42 = vsel %vm336_vm4, %v337_v2, %v793_v1 }
 0x12a   :  { %v335_v5 = vsel %vm333_vm5, %v791_v63, %v334_v3 }
 0x12b   :  { %v339_v24 = vsel %vm332_vm6, %v335_v5, %v338_v42 }
 0x12c   :  { %v340_v6 = vsel %vm329_vm7, nan, %v339_v24 }
 0x12d   :  { %353 = vrot.lane.b32.xlu1 %v340_v6, %s829_s2  ;;  %v795_v8 = vpop.eup %794 }
 0x12e   :  { %v797_v9 = vpop.eup %796  ;;  %v233_v10 = vxor.u32 2147483648, %v795_v8 }
 0x12f   :  { %v230_v11 = vxor.u32 2147483648, %v797_v9 }
 0x130   :  { %v234_v12 = vsel %vm232_vm8, %v233_v10, %v797_v9 }
 0x131   :  { %v231_v13 = vsel %vm229_vm9, %v795_v8, %v230_v11 }
 0x132   :  { %v235_v14 = vsel %vm228_vm10, %v231_v13, %v234_v12 }
 0x133   :  { %v236_v15 = vsel %vm225_vm11, nan, %v235_v14 }
 0x134   :  { %351 = vrot.lane.b32.xlu0 %v236_v15, %s829_s2 }
 0x19f   :  { %v354_v16 = vpop.permute.xlu1 %353 }
 0x1a6   :  { %v352_v18 = vpop.permute.xlu0 %351 }
 0x1a7   :  { %714 = vmatprep.mubr.msk.f32.mxu1 %vm355_vm12, %v352_v18 }
 0x1a8   :  { %715 = vmatmul.mubr.msk.f32.vlgmr.msra.gmra.mrb[0].mxu1 %vm355_vm12, %v354_v16 }
 0x27b   :  { %v716_v31 = vpop.f32.mrb[0].mxu1 }
 0x27c   :  { %v436_v33 = vadd.f32 %v716_v31, %v919_v17  ;;  %v426_v34 = vpop.f32.mrb[1].mxu1  ;;  %v540_v17 = vld [vmem:[%s1056_s7 + $0x10] sm:$0xff] }
 0x27d   :  { %v435_v35 = vadd.f32 %v426_v34, %v924_v19  ;;  %v541_v19 = vld [vmem:[%s1056_s7 + $0x18] sm:$0xff]  ;;  %s830_s7 = smov [#allocation2]  }
 0x27e   :  { %v438_v36 = vmul.f32 2.0, %v436_v33  ;;  %v767_v32 = vpack.c.bf16 %v541_v19, %v540_v17  ;;  %s637_s29 = sshll.u32 %s830_s7, 4  ;;  %s638_s29 = int_to_ptr.vmem [resolvable:$true] %s637_s29 }
 0x27f   :  { %v437_v41 = vmul.f32 2.0, %v435_v35  ;;  %s798_s6 = scalar_lea.vmem %s638_s29, 256  ;;  %p803_p1 = scmp.lt.s32.totalorder %s638_s29, %s638_s29 }
 0x280   :  { %v442_v29 = vadd.f32 %v440_v40, %v438_v36  ;;  %p799_p0 = scmp.ne.s32.totalorder %s638_s29, %s798_s6  ;;  %p804_p2 = scmp.lt.s32.totalorder %s798_s6, %s798_s6 }
 0x281   :  { %v441_v46 = vadd.f32 %v439_v37, %v437_v41 }
 0x282   :  { %p805_p3 = por %p804_p2, %p803_p1 }
 0x283   :  { %725 = vmatprep.mubr.msk.f32.mxu0 %vm454_vm13, %v441_v46 }
 0x284   :  { %726 = vmatmul.mubr.msk.f32.vlgmr.msra.gmra.mrb[2].mxu0 %vm454_vm13, %v442_v29  ;;  %p806_p4 = pnand %p805_p3, %p799_p0 }
 0x285   :  { %766 = vmatpush3.bf16.msra.mxu0 %v763_v30 }
 0x286   :  { %768 = vmatprep.subr.bf16.mxu0 %v767_v32 }
 0x289   :  { %770 = vmatpush3.bf16.msra.mxu0 %v767_v32 }
 0x357   :  { %v727_v50 = vpop.f32.mrb[2].mxu0 }
 0x358   :  { %v533_v52 = vadd.f32 %v727_v50, %v662_v48  ;;  %v527_v53 = vpop.f32.mrb[3].mxu0 }
 0x359   :  { %v528_v38 = vadd.f32 %v662_v48, %v527_v53 }
 0x35a   :  { %v537_v39 = vmax.f32 %v533_v52, 0.0 }
 0x35b   :  { %v536_v47 = vmax.f32 %v528_v38, 0.0 }
 0x35d   :  { %736 = vmatprep.mubr.msk.f32.mxu0 %vm454_vm13, %v536_v47 }
 0x35e   :  { %737 = vmatmul.mubr.msk.f32.vlgmr.msra.gmra.mrb[4].mxu0 %vm454_vm13, %v537_v39 }
 0x431   :  { %v738_v45 = vpop.f32.mrb[4].mxu0 }
 0x432   :  { %v627_v49 = vadd.f32 %v738_v45, %v665_v44  ;;  %v621_v51 = vpop.f32.mrb[5].mxu0 }
 0x433   :  { %v622_v54 = vadd.f32 %v665_v44, %v621_v51 }
 0x434   :  { %631 = vst [vmem:[#allocation2 + $0x8] sm:$0xff] %v627_v49 }
 0x435   :  { %630 = vst [vmem:[#allocation2] sm:$0xff] %v622_v54 }
 0x436   :  { %809 = shalt.err (!%p806_p4)
}
 0x437   :  { %s810_s8 = scalar_lea.hbm %s1058_s9, 256 }
 0x438   :  { %p811_p5 = scmp.ne.s32.totalorder %s1058_s9, %s810_s8  ;;  %p814_p6 = scmp.lt.u32.totalorder %s810_s8, %s1058_s9 }
 0x43a   :  { %p816_p7 = pnand %p814_p6, %p811_p5 }
 0x43c   :  { %819 = shalt.err (!%p816_p7)
}
 0x43d   :  { %s831_s14 = smov 128   ;;  %s832_s15 = smov 8  }
 0x43e   :  { %643 = dma.vmem_to_hbm [thread:$0]  %s638_s29, 256, %s1058_s9, [#allocation3], %s831_s14, %s831_s14, %s832_s15  }
 0x43f   :  { %820 = dma.done.wait [#allocation3], 256  }
 0x440   :  { %821 = vsyncadd [#allocation3], 4294967040 }
 0x441   :  { %647 = vsyncpa [#allocation3], 1 }

</bundles_post_ra>
